<compile_context>
chip_gen: v7x
topology: tpu7x:2x2x1
jax: 0.10.0
libtpu: 0.0.40
codegen_flags: <defaults>
</compile_context>

<pallas_src>
import math

import jax
import jax.numpy as jnp
from jax.experimental import pallas as pl
from jax.experimental.pallas import tpu as pltpu

# Small shapes consistent with the module (defaults shrunk).
B = 8            # batch
ENC_DIM = 32     # enc_dim
LATENT_DIM = 4   # latent_dim
CAT_DIM = 8      # cat_dim
Z_DIM = LATENT_DIM * CAT_DIM
EPS = 1e-20
LOG_UNIFORM = math.log(1.0 / CAT_DIM + EPS)   # compile-time constant


def _round_up(x, m):
    return (x + m - 1) // m * m


def vae_kernel(h_ref, w_ref, b_ref, u_ref, t_ref, nv_ref, s_ref, klp_ref):
    tb = h_ref.shape[0]
    tile = pl.program_id(0)

    # fc_z: z = h @ W^T + b.  W kept in torch (Z, E) layout; contract last dims
    # of both operands on the MXU (no wrapper-side transpose / extra HBM copy).
    z = jax.lax.dot_general(
        h_ref[...], w_ref[...],
        dimension_numbers=(((1,), (1,)), ((), ())),
        preferred_element_type=jnp.float32) + b_ref[...]

    inv_t = 1.0 / t_ref[0, 0]                     # hoisted scalar reciprocal

    def group(x, l):
        return x[:, l * CAT_DIM:(l + 1) * CAT_DIM]

    def bcast(parts):                             # [(tb,1)] * L -> (tb, Z_DIM)
        return jnp.concatenate(
            [jnp.broadcast_to(p, (tb, CAT_DIM)) for p in parts], axis=-1)

    # --- reparameterize: Gumbel-softmax over each latent group of CAT_DIM lanes ---
    g = -jnp.log(-jnp.log(u_ref[...] + EPS) + EPS)       # Gumbel noise
    logits = (z + g) * inv_t
    m_s = bcast([jnp.max(group(logits, l), axis=-1, keepdims=True)
                 for l in range(LATENT_DIM)])
    e_s = jnp.exp(logits - m_s)                           # one full-width exp
    d_inv = bcast([pl.reciprocal(
        jnp.sum(group(e_s, l), axis=-1, keepdims=True), approx=True)
        for l in range(LATENT_DIM)])
    s_ref[...] = (e_s * d_inv).astype(s_ref.dtype)        # single full-tile store

    # --- kl_divergence: softmax(z) per group vs. uniform categorical ---
    # log-softmax identity + analytic cross-entropy term:
    #   sum_c qp*log(qp)      == (sum_c e*q)/d - log(d)   (q = z - max, e = exp(q))
    #   sum_c qp*log(1/C+eps) == log(1/C+eps)             (since sum_c qp == 1)
    m_q = bcast([jnp.max(group(z, l), axis=-1, keepdims=True)
                 for l in range(LATENT_DIM)])
    q = z - m_q
    e_q = jnp.exp(q)                                      # one full-width exp
    eq_q = e_q * q
    per_row = jnp.zeros((tb, 1), jnp.float32)
    for l in range(LATENT_DIM):                           # narrow (tb,1) log / divide
        d = jnp.sum(group(e_q, l), axis=-1, keepdims=True)
        sq = jnp.sum(group(eq_q, l), axis=-1, keepdims=True)
        per_row = per_row + sq / d - jnp.log(d)
    per_row = per_row - jnp.float32(LATENT_DIM * LOG_UNIFORM)

    # Mask batch rows that were padded up to the tile so they don't pollute the mean.
    row_id = tile * tb + jax.lax.broadcasted_iota(jnp.int32, (tb, 1), 0)
    valid = (row_id < nv_ref[0, 0]).astype(jnp.float32)
    klp_ref[...] = jnp.sum(per_row * valid).reshape(1, 1)


def generic_vae_forward(h, W, b, u, t):
    """h:(B,E); W:(Z,E) torch Linear layout; b:(Z,); u:(B,Z) uniform noise; t scalar."""
    b_real, enc_dim = h.shape
    z_dim = W.shape[0]

    # Batch tiling: one tile for small batches, 256-row tiles for real batches.
    tb = min(256, _round_up(b_real, 8))
    b_pad = _round_up(b_real, tb)
    n_tiles = b_pad // tb
    if b_pad != b_real:
        h = jnp.pad(h, ((0, b_pad - b_real), (0, 0)))
        u = jnp.pad(u, ((0, b_pad - b_real), (0, 0)), constant_values=0.5)

    b2 = b.reshape(1, z_dim)
    t2 = jnp.asarray(t, jnp.float32).reshape(1, 1)
    nv = jnp.asarray(b_real, jnp.int32).reshape(1, 1)

    s, klp = pl.pallas_call(
        vae_kernel,
        out_shape=(
            jax.ShapeDtypeStruct((b_pad, z_dim), jnp.float32),
            jax.ShapeDtypeStruct((n_tiles, 1), jnp.float32),
        ),
        grid=(n_tiles,),
        in_specs=[
            pl.BlockSpec((tb, enc_dim), lambda i: (i, 0)),        # h batch tile
            pl.BlockSpec((z_dim, enc_dim), lambda i: (0, 0)),     # W (resident)
            pl.BlockSpec((1, z_dim), lambda i: (0, 0)),           # bias (resident)
            pl.BlockSpec((tb, z_dim), lambda i: (i, 0)),          # u batch tile
            pl.BlockSpec(memory_space=pltpu.MemorySpace.SMEM),    # temperature t
            pl.BlockSpec(memory_space=pltpu.MemorySpace.SMEM),    # n_valid rows
        ],
        out_specs=(
            pl.BlockSpec((tb, z_dim), lambda i: (i, 0)),          # s batch tile
            pl.BlockSpec((1, 1), lambda i: (i, 0)),               # kl partial sum
        ),
        compiler_params=pltpu.CompilerParams(
            dimension_semantics=("parallel",)),
    )(h, W, b2, u, t2, nv)

    kl = jnp.sum(klp) / b_real          # mean over batch folded into the wrapper
    return s[:b_real], kl


def reference_forward(h, W, b, u, t):
    z = h @ W.T + b                                             # (B, Z)
    z3 = z.reshape(B, LATENT_DIM, CAT_DIM)
    u3 = u.reshape(B, LATENT_DIM, CAT_DIM)
    g = -jnp.log(-jnp.log(u3 + EPS) + EPS)
    s = jax.nn.softmax((z3 + g) / t, axis=-1).reshape(B, Z_DIM)
    qp = jax.nn.softmax(z3, axis=-1)
    e = qp * jnp.log(qp + EPS)
    ce = qp * jnp.log(1.0 / CAT_DIM + EPS)
    kl = jnp.mean(jnp.sum(e - ce, axis=(1, 2)), axis=0)
    return s, kl


if __name__ == "__main__":
    key = jax.random.PRNGKey(0)
    k_h, k_w, k_b, k_u = jax.random.split(key, 4)

    # Deterministic parameter init (PyTorch Linear-style uniform bounds).
    bound = 1.0 / (ENC_DIM ** 0.5)
    W = jax.random.uniform(k_w, (Z_DIM, ENC_DIM), jnp.float32, -bound, bound)
    b = jax.random.uniform(k_b, (Z_DIM,), jnp.float32, -bound, bound)
    t = jnp.float32(0.5)                      # gen_param(t) default

    # Inputs: encoded features h (what a subclass encoder would produce) and the
    # uniform noise consumed by reparameterize (torch.rand_like(z)), passed in
    # explicitly for determinism against the reference.
    h = jax.random.normal(k_h, (B, ENC_DIM), jnp.float32)
    u = jax.random.uniform(k_u, (B, Z_DIM), jnp.float32)

    s, kl = generic_vae_forward(h, W, b, u, t)
    jax.block_until_ready((s, kl))

    s_ref, kl_ref = reference_forward(h, W, b, u, t)
    assert s.shape == (B, Z_DIM)
    # Slightly loosened tolerance: the sampling-softmax denominator uses the
    # approximate EUP reciprocal (rel err ~2e-4); the KL path stays exact.
    assert jnp.allclose(s, s_ref, atol=2e-3, rtol=2e-3)
    assert jnp.allclose(kl, kl_ref, atol=2e-3, rtol=2e-3)

    # TODO(synk): training_step / validation_step / update_t are host-side
    # training glue (data loaders, metrics, temperature annealing), not kernel
    # compute, and are not reproduced here.
    print("KERNEL_OK")
</pallas_src>

<mosaic_0001>
module attributes {stable_mosaic.version = 11 : i64} {
  func.func @vae_kernel(%arg0: i32, %arg1: memref<8x32xf32, #tpu.memory_space<vmem>>, %arg2: memref<32x32xf32, #tpu.memory_space<vmem>>, %arg3: memref<1x32xf32, #tpu.memory_space<vmem>>, %arg4: memref<8x32xf32, #tpu.memory_space<vmem>>, %arg5: memref<1x1xf32, #tpu.memory_space<smem>>, %arg6: memref<1x1xi32, #tpu.memory_space<smem>>, %arg7: memref<8x32xf32, #tpu.memory_space<vmem>>, %arg8: memref<1x1xf32, #tpu.memory_space<vmem>>) attributes {dimension_semantics = [#tpu.dimension_semantics<parallel>], iteration_bounds = array<i64: 1>, scalar_prefetch = 0 : i64, scratch_operands = 0 : i64, tpu.core_type = #tpu.core_type<tc>, window_params = [{transform_indices = @transform_0, window_bounds = array<i64: 8, 32>}, {pipeline_mode = #tpu.pipeline_mode<synchronous>, transform_indices = @transform_1, window_bounds = array<i64: 32, 32>}, {pipeline_mode = #tpu.pipeline_mode<synchronous>, transform_indices = @transform_2, window_bounds = array<i64: 1, 32>}, {transform_indices = @transform_3, window_bounds = array<i64: 8, 32>}, {transform_indices = @transform_4, window_bounds = array<i64: 1, 1>}, {transform_indices = @transform_5, window_bounds = array<i64: 1, 1>}, {transform_indices = @transform_6, window_bounds = array<i64: 8, 32>}, {transform_indices = @transform_7, window_bounds = array<i64: 1, 1>}]} {
    %c0 = arith.constant 0 : index
    %c0_0 = arith.constant 0 : index
    %0 = vector.load %arg1[%c0, %c0_0] : memref<8x32xf32, #tpu.memory_space<vmem>>, vector<8x32xf32>
    %c0_1 = arith.constant 0 : index
    %c0_2 = arith.constant 0 : index
    %1 = vector.load %arg2[%c0_1, %c0_2] : memref<32x32xf32, #tpu.memory_space<vmem>>, vector<32x32xf32>
    %cst = arith.constant dense<0.000000e+00> : vector<8x32xf32>
    %2 = tpu.matmul %0, %1, %cst {dimension_numbers = #tpu.dot_dimension_numbers<[1], [1], [0], [0], [0, 0, 1, 0], [], []>} : vector<8x32xf32>, vector<32x32xf32>, vector<8x32xf32> -> vector<8x32xf32>
    %c0_3 = arith.constant 0 : index
    %c0_4 = arith.constant 0 : index
    %3 = vector.load %arg3[%c0_3, %c0_4] : memref<1x32xf32, #tpu.memory_space<vmem>>, vector<1x32xf32>
    %4 = vector.broadcast %3 : vector<1x32xf32> to vector<8x32xf32>
    %5 = arith.addf %2, %4 : vector<8x32xf32>
    %c0_5 = arith.constant 0 : index
    %c0_6 = arith.constant 0 : index
    %6 = memref.load %arg5[%c0_5, %c0_6] : memref<1x1xf32, #tpu.memory_space<smem>>
    %cst_7 = arith.constant 1.000000e+00 : f32
    %7 = arith.divf %cst_7, %6 : f32
    %c0_8 = arith.constant 0 : index
    %c0_9 = arith.constant 0 : index
    %8 = vector.load %arg4[%c0_8, %c0_9] : memref<8x32xf32, #tpu.memory_space<vmem>>, vector<8x32xf32>
    %cst_10 = arith.constant 9.99999968E-21 : f32
    %9 = vector.broadcast %cst_10 : f32 to vector<8x32xf32>
    %10 = arith.addf %8, %9 : vector<8x32xf32>
    %11 = math.log %10 : vector<8x32xf32>
    %cst_11 = arith.constant 0.000000e+00 : f32
    %12 = vector.broadcast %cst_11 : f32 to vector<8x32xf32>
    %13 = arith.subf %12, %11 : vector<8x32xf32>
    %cst_12 = arith.constant 9.99999968E-21 : f32
    %14 = vector.broadcast %cst_12 : f32 to vector<8x32xf32>
    %15 = arith.addf %13, %14 : vector<8x32xf32>
    %16 = math.log %15 : vector<8x32xf32>
    %cst_13 = arith.constant 0.000000e+00 : f32
    %17 = vector.broadcast %cst_13 : f32 to vector<8x32xf32>
    %18 = arith.subf %17, %16 : vector<8x32xf32>
    %19 = arith.addf %5, %18 : vector<8x32xf32>
    %20 = vector.broadcast %7 : f32 to vector<8x32xf32>
    %21 = arith.mulf %19, %20 : vector<8x32xf32>
    %22 = vector.extract_strided_slice %21 {offsets = [0, 0], sizes = [8, 8], strides = [1, 1]} : vector<8x32xf32> to vector<8x8xf32>
    %cst_14 = arith.constant dense<0xFF800000> : vector<8xf32>
    %23 = vector.multi_reduction <maximumf>, %22, %cst_14 [1] : vector<8x8xf32> to vector<8xf32>
    %24 = vector.shape_cast %23 : vector<8xf32> to vector<8x1xf32>
    %25 = vector.extract_strided_slice %21 {offsets = [0, 8], sizes = [8, 8], strides = [1, 1]} : vector<8x32xf32> to vector<8x8xf32>
    %cst_15 = arith.constant dense<0xFF800000> : vector<8xf32>
    %26 = vector.multi_reduction <maximumf>, %25, %cst_15 [1] : vector<8x8xf32> to vector<8xf32>
    %27 = vector.shape_cast %26 : vector<8xf32> to vector<8x1xf32>
    %28 = vector.extract_strided_slice %21 {offsets = [0, 16], sizes = [8, 8], strides = [1, 1]} : vector<8x32xf32> to vector<8x8xf32>
    %cst_16 = arith.constant dense<0xFF800000> : vector<8xf32>
    %29 = vector.multi_reduction <maximumf>, %28, %cst_16 [1] : vector<8x8xf32> to vector<8xf32>
    %30 = vector.shape_cast %29 : vector<8xf32> to vector<8x1xf32>
    %31 = vector.extract_strided_slice %21 {offsets = [0, 24], sizes = [8, 8], strides = [1, 1]} : vector<8x32xf32> to vector<8x8xf32>
    %cst_17 = arith.constant dense<0xFF800000> : vector<8xf32>
    %32 = vector.multi_reduction <maximumf>, %31, %cst_17 [1] : vector<8x8xf32> to vector<8xf32>
    %33 = vector.shape_cast %32 : vector<8xf32> to vector<8x1xf32>
    %34 = vector.shape_cast %24 : vector<8x1xf32> to vector<8x1xf32>
    %35 = vector.broadcast %34 : vector<8x1xf32> to vector<8x8xf32>
    %36 = vector.shape_cast %27 : vector<8x1xf32> to vector<8x1xf32>
    %37 = vector.broadcast %36 : vector<8x1xf32> to vector<8x8xf32>
    %38 = vector.shape_cast %30 : vector<8x1xf32> to vector<8x1xf32>
    %39 = vector.broadcast %38 : vector<8x1xf32> to vector<8x8xf32>
    %40 = vector.shape_cast %33 : vector<8x1xf32> to vector<8x1xf32>
    %41 = vector.broadcast %40 : vector<8x1xf32> to vector<8x8xf32>
    %42 = tpu.concatenate %35, %37, %39, %41 in 1 : vector<8x8xf32>, vector<8x8xf32>, vector<8x8xf32>, vector<8x8xf32> -> vector<8x32xf32>
    %43 = arith.subf %21, %42 : vector<8x32xf32>
    %44 = math.exp %43 : vector<8x32xf32>
    %45 = vector.extract_strided_slice %44 {offsets = [0, 0], sizes = [8, 8], strides = [1, 1]} : vector<8x32xf32> to vector<8x8xf32>
    %cst_18 = arith.constant dense<0.000000e+00> : vector<8xf32>
    %46 = vector.multi_reduction <add>, %45, %cst_18 [1] : vector<8x8xf32> to vector<8xf32>
    %47 = vector.shape_cast %46 : vector<8xf32> to vector<8x1xf32>
    %48 = tpu.reciprocal %47 {approx = true} : vector<8x1xf32> -> vector<8x1xf32>
    %49 = vector.extract_strided_slice %44 {offsets = [0, 8], sizes = [8, 8], strides = [1, 1]} : vector<8x32xf32> to vector<8x8xf32>
    %cst_19 = arith.constant dense<0.000000e+00> : vector<8xf32>
    %50 = vector.multi_reduction <add>, %49, %cst_19 [1] : vector<8x8xf32> to vector<8xf32>
    %51 = vector.shape_cast %50 : vector<8xf32> to vector<8x1xf32>
    %52 = tpu.reciprocal %51 {approx = true} : vector<8x1xf32> -> vector<8x1xf32>
    %53 = vector.extract_strided_slice %44 {offsets = [0, 16], sizes = [8, 8], strides = [1, 1]} : vector<8x32xf32> to vector<8x8xf32>
    %cst_20 = arith.constant dense<0.000000e+00> : vector<8xf32>
    %54 = vector.multi_reduction <add>, %53, %cst_20 [1] : vector<8x8xf32> to vector<8xf32>
    %55 = vector.shape_cast %54 : vector<8xf32> to vector<8x1xf32>
    %56 = tpu.reciprocal %55 {approx = true} : vector<8x1xf32> -> vector<8x1xf32>
    %57 = vector.extract_strided_slice %44 {offsets = [0, 24], sizes = [8, 8], strides = [1, 1]} : vector<8x32xf32> to vector<8x8xf32>
    %cst_21 = arith.constant dense<0.000000e+00> : vector<8xf32>
    %58 = vector.multi_reduction <add>, %57, %cst_21 [1] : vector<8x8xf32> to vector<8xf32>
    %59 = vector.shape_cast %58 : vector<8xf32> to vector<8x1xf32>
    %60 = tpu.reciprocal %59 {approx = true} : vector<8x1xf32> -> vector<8x1xf32>
    %61 = vector.shape_cast %48 : vector<8x1xf32> to vector<8x1xf32>
    %62 = vector.broadcast %61 : vector<8x1xf32> to vector<8x8xf32>
    %63 = vector.shape_cast %52 : vector<8x1xf32> to vector<8x1xf32>
    %64 = vector.broadcast %63 : vector<8x1xf32> to vector<8x8xf32>
    %65 = vector.shape_cast %56 : vector<8x1xf32> to vector<8x1xf32>
    %66 = vector.broadcast %65 : vector<8x1xf32> to vector<8x8xf32>
    %67 = vector.shape_cast %60 : vector<8x1xf32> to vector<8x1xf32>
    %68 = vector.broadcast %67 : vector<8x1xf32> to vector<8x8xf32>
    %69 = tpu.concatenate %62, %64, %66, %68 in 1 : vector<8x8xf32>, vector<8x8xf32>, vector<8x8xf32>, vector<8x8xf32> -> vector<8x32xf32>
    %70 = arith.mulf %44, %69 : vector<8x32xf32>
    %c0_22 = arith.constant 0 : index
    %c0_23 = arith.constant 0 : index
    %71 = vector.load %arg7[%c0_22, %c0_23] : memref<8x32xf32, #tpu.memory_space<vmem>>, vector<8x32xf32>
    tpu.vector_store %arg7[%c0_22, %c0_23], %70 {strides = array<i32>} : memref<8x32xf32, #tpu.memory_space<vmem>>, vector<8x32xf32>,
    %72 = vector.extract_strided_slice %5 {offsets = [0, 0], sizes = [8, 8], strides = [1, 1]} : vector<8x32xf32> to vector<8x8xf32>
    %cst_24 = arith.constant dense<0xFF800000> : vector<8xf32>
    %73 = vector.multi_reduction <maximumf>, %72, %cst_24 [1] : vector<8x8xf32> to vector<8xf32>
    %74 = vector.shape_cast %73 : vector<8xf32> to vector<8x1xf32>
    %75 = vector.extract_strided_slice %5 {offsets = [0, 8], sizes = [8, 8], strides = [1, 1]} : vector<8x32xf32> to vector<8x8xf32>
    %cst_25 = arith.constant dense<0xFF800000> : vector<8xf32>
    %76 = vector.multi_reduction <maximumf>, %75, %cst_25 [1] : vector<8x8xf32> to vector<8xf32>
    %77 = vector.shape_cast %76 : vector<8xf32> to vector<8x1xf32>
    %78 = vector.extract_strided_slice %5 {offsets = [0, 16], sizes = [8, 8], strides = [1, 1]} : vector<8x32xf32> to vector<8x8xf32>
    %cst_26 = arith.constant dense<0xFF800000> : vector<8xf32>
    %79 = vector.multi_reduction <maximumf>, %78, %cst_26 [1] : vector<8x8xf32> to vector<8xf32>
    %80 = vector.shape_cast %79 : vector<8xf32> to vector<8x1xf32>
    %81 = vector.extract_strided_slice %5 {offsets = [0, 24], sizes = [8, 8], strides = [1, 1]} : vector<8x32xf32> to vector<8x8xf32>
    %cst_27 = arith.constant dense<0xFF800000> : vector<8xf32>
    %82 = vector.multi_reduction <maximumf>, %81, %cst_27 [1] : vector<8x8xf32> to vector<8xf32>
    %83 = vector.shape_cast %82 : vector<8xf32> to vector<8x1xf32>
    %84 = vector.shape_cast %74 : vector<8x1xf32> to vector<8x1xf32>
    %85 = vector.broadcast %84 : vector<8x1xf32> to vector<8x8xf32>
    %86 = vector.shape_cast %77 : vector<8x1xf32> to vector<8x1xf32>
    %87 = vector.broadcast %86 : vector<8x1xf32> to vector<8x8xf32>
    %88 = vector.shape_cast %80 : vector<8x1xf32> to vector<8x1xf32>
    %89 = vector.broadcast %88 : vector<8x1xf32> to vector<8x8xf32>
    %90 = vector.shape_cast %83 : vector<8x1xf32> to vector<8x1xf32>
    %91 = vector.broadcast %90 : vector<8x1xf32> to vector<8x8xf32>
    %92 = tpu.concatenate %85, %87, %89, %91 in 1 : vector<8x8xf32>, vector<8x8xf32>, vector<8x8xf32>, vector<8x8xf32> -> vector<8x32xf32>
    %93 = arith.subf %5, %92 : vector<8x32xf32>
    %94 = math.exp %93 : vector<8x32xf32>
    %95 = arith.mulf %94, %93 : vector<8x32xf32>
    %cst_28 = arith.constant 0.000000e+00 : f32
    %96 = vector.broadcast %cst_28 : f32 to vector<8x1xf32>
    %97 = vector.extract_strided_slice %94 {offsets = [0, 0], sizes = [8, 8], strides = [1, 1]} : vector<8x32xf32> to vector<8x8xf32>
    %cst_29 = arith.constant dense<0.000000e+00> : vector<8xf32>
    %98 = vector.multi_reduction <add>, %97, %cst_29 [1] : vector<8x8xf32> to vector<8xf32>
    %99 = vector.shape_cast %98 : vector<8xf32> to vector<8x1xf32>
    %100 = vector.extract_strided_slice %95 {offsets = [0, 0], sizes = [8, 8], strides = [1, 1]} : vector<8x32xf32> to vector<8x8xf32>
    %cst_30 = arith.constant dense<0.000000e+00> : vector<8xf32>
    %101 = vector.multi_reduction <add>, %100, %cst_30 [1] : vector<8x8xf32> to vector<8xf32>
    %102 = vector.shape_cast %101 : vector<8xf32> to vector<8x1xf32>
    %103 = arith.divf %102, %99 : vector<8x1xf32>
    %104 = arith.addf %96, %103 : vector<8x1xf32>
    %105 = math.log %99 : vector<8x1xf32>
    %106 = arith.subf %104, %105 : vector<8x1xf32>
    %107 = vector.extract_strided_slice %94 {offsets = [0, 8], sizes = [8, 8], strides = [1, 1]} : vector<8x32xf32> to vector<8x8xf32>
    %cst_31 = arith.constant dense<0.000000e+00> : vector<8xf32>
    %108 = vector.multi_reduction <add>, %107, %cst_31 [1] : vector<8x8xf32> to vector<8xf32>
    %109 = vector.shape_cast %108 : vector<8xf32> to vector<8x1xf32>
    %110 = vector.extract_strided_slice %95 {offsets = [0, 8], sizes = [8, 8], strides = [1, 1]} : vector<8x32xf32> to vector<8x8xf32>
    %cst_32 = arith.constant dense<0.000000e+00> : vector<8xf32>
    %111 = vector.multi_reduction <add>, %110, %cst_32 [1] : vector<8x8xf32> to vector<8xf32>
    %112 = vector.shape_cast %111 : vector<8xf32> to vector<8x1xf32>
    %113 = arith.divf %112, %109 : vector<8x1xf32>
    %114 = arith.addf %106, %113 : vector<8x1xf32>
    %115 = math.log %109 : vector<8x1xf32>
    %116 = arith.subf %114, %115 : vector<8x1xf32>
    %117 = vector.extract_strided_slice %94 {offsets = [0, 16], sizes = [8, 8], strides = [1, 1]} : vector<8x32xf32> to vector<8x8xf32>
    %cst_33 = arith.constant dense<0.000000e+00> : vector<8xf32>
    %118 = vector.multi_reduction <add>, %117, %cst_33 [1] : vector<8x8xf32> to vector<8xf32>
    %119 = vector.shape_cast %118 : vector<8xf32> to vector<8x1xf32>
    %120 = vector.extract_strided_slice %95 {offsets = [0, 16], sizes = [8, 8], strides = [1, 1]} : vector<8x32xf32> to vector<8x8xf32>
    %cst_34 = arith.constant dense<0.000000e+00> : vector<8xf32>
    %121 = vector.multi_reduction <add>, %120, %cst_34 [1] : vector<8x8xf32> to vector<8xf32>
    %122 = vector.shape_cast %121 : vector<8xf32> to vector<8x1xf32>
    %123 = arith.divf %122, %119 : vector<8x1xf32>
    %124 = arith.addf %116, %123 : vector<8x1xf32>
    %125 = math.log %119 : vector<8x1xf32>
    %126 = arith.subf %124, %125 : vector<8x1xf32>
    %127 = vector.extract_strided_slice %94 {offsets = [0, 24], sizes = [8, 8], strides = [1, 1]} : vector<8x32xf32> to vector<8x8xf32>
    %cst_35 = arith.constant dense<0.000000e+00> : vector<8xf32>
    %128 = vector.multi_reduction <add>, %127, %cst_35 [1] : vector<8x8xf32> to vector<8xf32>
    %129 = vector.shape_cast %128 : vector<8xf32> to vector<8x1xf32>
    %130 = vector.extract_strided_slice %95 {offsets = [0, 24], sizes = [8, 8], strides = [1, 1]} : vector<8x32xf32> to vector<8x8xf32>
    %cst_36 = arith.constant dense<0.000000e+00> : vector<8xf32>
    %131 = vector.multi_reduction <add>, %130, %cst_36 [1] : vector<8x8xf32> to vector<8xf32>
    %132 = vector.shape_cast %131 : vector<8xf32> to vector<8x1xf32>
    %133 = arith.divf %132, %129 : vector<8x1xf32>
    %134 = arith.addf %126, %133 : vector<8x1xf32>
    %135 = math.log %129 : vector<8x1xf32>
    %136 = arith.subf %134, %135 : vector<8x1xf32>
    %cst_37 = arith.constant -8.31776618 : f32
    %137 = vector.broadcast %cst_37 : f32 to vector<8x1xf32>
    %138 = arith.subf %136, %137 : vector<8x1xf32>
    %c8_i32 = arith.constant 8 : i32
    %139 = arith.muli %arg0, %c8_i32 : i32
    %140 = tpu.iota {dimensions = array<i32: 0>} : vector<8x1xi32>
    %141 = vector.broadcast %139 : i32 to vector<8x1xi32>
    %142 = arith.addi %141, %140 : vector<8x1xi32>
    %c0_38 = arith.constant 0 : index
    %c0_39 = arith.constant 0 : index
    %143 = memref.load %arg6[%c0_38, %c0_39] : memref<1x1xi32, #tpu.memory_space<smem>>
    %144 = vector.broadcast %143 : i32 to vector<8x1xi32>
    %145 = arith.cmpi slt, %142, %144 : vector<8x1xi32>
    %146 = arith.extui %145 : vector<8x1xi1> to vector<8x1xi32>
    %147 = arith.sitofp %146 : vector<8x1xi32> to vector<8x1xf32>
    %148 = arith.mulf %138, %147 : vector<8x1xf32>
    %149 = vector.shape_cast %148 : vector<8x1xf32> to vector<1x8x1xf32>
    %cst_40 = arith.constant dense<0.000000e+00> : vector<1xf32>
    %150 = vector.multi_reduction <add>, %149, %cst_40 [1, 2] : vector<1x8x1xf32> to vector<1xf32>
    %151 = vector.shape_cast %150 : vector<1xf32> to vector<1x1x1xf32>
    %152 = vector.extract %151[0, 0, 0] : f32 from vector<1x1x1xf32>
    %153 = vector.broadcast %152 : f32 to vector<1x1xf32>
    %c0_41 = arith.constant 0 : index
    %c0_42 = arith.constant 0 : index
    %154 = vector.load %arg8[%c0_41, %c0_42] : memref<1x1xf32, #tpu.memory_space<vmem>>, vector<1x1xf32>
    tpu.vector_store %arg8[%c0_41, %c0_42], %153 {strides = array<i32>} : memref<1x1xf32, #tpu.memory_space<vmem>>, vector<1x1xf32>,
    return
  }
  func.func @transform_0(%arg0: i32) -> (i32, i32) {
    %c0_i32 = arith.constant 0 : i32
    %c0_i32_0 = arith.constant 0 : i32
    return %arg0, %c0_i32 : i32, i32
  }
  func.func @transform_1(%arg0: i32) -> (i32, i32) {
    %c0_i32 = arith.constant 0 : i32
    %c0_i32_0 = arith.constant 0 : i32
    %c0_i32_1 = arith.constant 0 : i32
    return %c0_i32, %c0_i32_0 : i32, i32
  }
  func.func @transform_2(%arg0: i32) -> (i32, i32) {
    %c0_i32 = arith.constant 0 : i32
    %c0_i32_0 = arith.constant 0 : i32
    %c0_i32_1 = arith.constant 0 : i32
    return %c0_i32, %c0_i32_0 : i32, i32
  }
  func.func @transform_3(%arg0: i32) -> (i32, i32) {
    %c0_i32 = arith.constant 0 : i32
    %c0_i32_0 = arith.constant 0 : i32
    return %arg0, %c0_i32 : i32, i32
  }
  func.func @transform_4(%arg0: i32) -> (i32, i32) {
    %c0_i32 = arith.constant 0 : i32
    %c0_i32_0 = arith.constant 0 : i32
    %c0_i32_1 = arith.constant 0 : i32
    return %c0_i32, %c0_i32_0 : i32, i32
  }
  func.func @transform_5(%arg0: i32) -> (i32, i32) {
    %c0_i32 = arith.constant 0 : i32
    %c0_i32_0 = arith.constant 0 : i32
    %c0_i32_1 = arith.constant 0 : i32
    return %c0_i32, %c0_i32_0 : i32, i32
  }
  func.func @transform_6(%arg0: i32) -> (i32, i32) {
    %c0_i32 = arith.constant 0 : i32
    %c0_i32_0 = arith.constant 0 : i32
    return %arg0, %c0_i32 : i32, i32
  }
  func.func @transform_7(%arg0: i32) -> (i32, i32) {
    %c0_i32 = arith.constant 0 : i32
    %c0_i32_0 = arith.constant 0 : i32
    return %arg0, %c0_i32 : i32, i32
  }
}

</mosaic_0001>

<bundles_post_ra>
// kernel: tpu_custom_call.1
= control target key start
LH: loop header
LB: loop body
LE: loop exit
PB: predicated region body
PF: predicated region fallthrough
CT: control target
= control target key end

     0   :  { %15 = vsyncpa [#allocation5], 0  ;;  %s715_s0 = inlined_call_operand.hbm [shape: f32[8,32], index: 0, kind: input, shape index: {}]   ;;  %s716_s1 = inlined_call_operand.hbm [shape: f32[32,32], index: 1, kind: input, shape index: {}]   ;;  %s717_s2 = inlined_call_operand.vmem [shape: f32[1,32], index: 2, kind: input, shape index: {}]   ;;  %s718_s3 = inlined_call_operand.vmem [shape: f32[8,32], index: 3, kind: input, shape index: {}]   ;;  %s719_s4 = inlined_call_operand.<no memory space> [shape: f32[1,1], index: 4, kind: input, shape index: {}]   ;;  %s720_s5 = inlined_call_operand.<no memory space> [shape: s32[1,1], index: 5, kind: input, shape index: {}]   ;;  %s721_s6 = inlined_call_operand.hbm [shape: f32[8,32], index: 6, kind: output, shape index: {0}]   ;;  %s722_s7 = inlined_call_operand.hbm [shape: f32[1,1], index: 7, kind: output, shape index: {1}]  }
   0x1   :  { %16 = vsyncpa [#allocation8], 0 }
   0x2   :  { %17 = vsyncpa [#allocation6], 0 }
   0x3   :  { %18 = vsyncpa [#allocation11], 0  ;;  %s545_s24 = smov [#allocation4]   ;;  %s546_s26 = smov [#allocation7]  }
   0x4   :  { %s25_s25 = sshll.u32 %s545_s24, 4  ;;  %s34_s27 = sshll.u32 %s546_s26, 4  ;;  %s26_s25 = int_to_ptr.vmem [resolvable:$true] %s25_s25  ;;  %s597_s27 = int_to_ptr.vmem [resolvable:$true] %s34_s27 }
   0x5   :  { %s449_s30 = scalar_lea.hbm %s715_s0, 128 }
   0x6   :  { %p450_p0 = scmp.ne.s32.totalorder %s715_s0, %s449_s30  ;;  %p453_p1 = scmp.lt.u32.totalorder %s449_s30, %s715_s0 }
   0x8   :  { %p455_p2 = pnand %p453_p1, %p450_p0 }
   0xa   :  { %458 = shalt.err (!%p455_p2)
}
   0xb   :  { %s459_s12 = scalar_lea.vmem %s26_s25, 128  ;;  %p464_p4 = scmp.lt.s32.totalorder %s26_s25, %s26_s25 }
   0xc   :  { %p460_p3 = scmp.ne.s32.totalorder %s26_s25, %s459_s12  ;;  %p465_p5 = scmp.lt.s32.totalorder %s459_s12, %s459_s12 }
   0xe   :  { %p466_p6 = por %p465_p5, %p464_p4 }
  0x10   :  { %p467_p7 = pnand %p466_p6, %p460_p3 }
  0x12   :  { %470 = shalt.err (!%p467_p7)
}
  0x13   :  { %28 = dma.hbm_to_vmem [thread:$0]  %s715_s0, 128, %s26_s25, [#allocation5]  }
  0x14   :  { %s471_s17 = scalar_lea.hbm %s716_s1, 512 }
  0x15   :  { %p472_p8 = scmp.ne.s32.totalorder %s716_s1, %s471_s17  ;;  %p475_p9 = scmp.lt.u32.totalorder %s471_s17, %s716_s1 }
  0x17   :  { %p477_p10 = pnand %p475_p9, %p472_p8 }
  0x19   :  { %480 = shalt.err (!%p477_p10)
}
  0x1a   :  { %s481_s22 = scalar_lea.vmem %s597_s27, 512  ;;  %p486_p12 = scmp.lt.s32.totalorder %s597_s27, %s597_s27 }
  0x1b   :  { %p482_p11 = scmp.ne.s32.totalorder %s597_s27, %s481_s22  ;;  %p487_p13 = scmp.lt.s32.totalorder %s481_s22, %s481_s22 }
  0x1d   :  { %p488_p0 = por %p487_p13, %p486_p12 }
  0x1f   :  { %p489_p1 = pnand %p488_p0, %p482_p11 }
  0x21   :  { %492 = shalt.err (!%p489_p1)
}
  0x22   :  { %s547_s0 = smov 128   ;;  %s548_s23 = smov 8  }
  0x23   :  { %40 = dma.hbm_to_vmem [thread:$0]  %s716_s1, 512, %s597_s27, [#allocation8], %s547_s0, %s547_s0, %s548_s23  }
  0x24   :  { %537 = dma.done.wait [#allocation5], 128  }
  0x25   :  { %538 = vsyncadd [#allocation5], 4294967168 }
  0x26   :  { %539 = dma.done.wait [#allocation8], 512  }
  0x27   :  { %540 = vsyncadd [#allocation8], 4294966784  ;;  %v549_v0 = vmov 0.0|0.0   ;;  %vm550_vm0 = vmmov 0   ;;  %v551_v1 = vmov 0.0   ;;  %v154_v2 = vstv %s719_s4  ;;  %v56_v3 = vld [vmem:[#allocation7] sm:$0xff] }
  0x28   :  { %391 = vmatprep.subr.bf16.mxu0 %v549_v0  ;;  %388 = vmatprep.mubr.msk.f32.mxu0 %vm550_vm0, %v551_v1  ;;  %415 = vrcp.f32 %v154_v2  ;;  %vm67_vm1 = vcmask 261120   ;;  %v57_v4 = vld [vmem:[#allocation7 + $0x8] sm:$0xff]  ;;  %v58_v6 = vld [vmem:[#allocation7 + $0x10] sm:$0xff]  ;;  %v59_v7 = vld [vmem:[#allocation7 + $0x18] sm:$0xff]  ;;  %vm177_vm3 = vcmask 195712   ;;  %vm169_vm4 = vcmask 64512  }
  0x29   :  { %vm393_vm2 = vmpackc.low %vm67_vm1, %vm67_vm1  ;;  %v392_v5 = vpack.c.bf16 %v57_v4, %v56_v3  ;;  %v396_v9 = vpack.c.bf16 %v59_v7, %v58_v6  ;;  %v55_v10 = vld [vmem:[#allocation4] sm:$0xff]  ;;  %vm181_vm5 = vcmask 261312   ;;  %vm173_vm6 = vcmask 130112   ;;  %s553_s29 = smov 120   ;;  %s554_s30 = smov 104  }
  0x2a   :  { %v367_v11 = vld [vmem:[%s717_s2] ss:$0 sm:$0xff]  ;;  %vm186_vm7 = vcmask 130048   ;;  %vm188_vm8 = vcmask 195584   ;;  %vm323_vm10 = vcmask 7168  }
  0x2b   :  { %394 = vmatpush3.bf16.xpose.msk.msra.mxu0 %vm393_vm2, %v392_v5  ;;  %v157_v19 = vld [vmem:[%s718_s3] sm:$0xff]  ;;  %s552_s3 = smov 112  }
  0x2c   :  { %395 = vmatprep.subr.bf16.mxu0 %v549_v0  ;;  %v158_v22 = vadd.f32 1e-20, %v157_v19 }
  0x2e   :  { %417 = vlog2.f32 %v158_v22  ;;  %v313_v22 = vlaneseq }
  0x32   :  { %v416_v8 = vpop.eup %415 }
  0x33   :  { %399 = vpush %v416_v8  ;;  %398 = vmatpush3.bf16.xpose.msk.msra.mxu0 %vm393_vm2, %v396_v9 }
  0x38   :  { %v418_v30 = vpop.eup %417 }
  0x39   :  { %v160_v31 = vmul.f32 0.6931472, %v418_v30 }
  0x3a   :  { %389 = vmatmul.mubr.msk.f32.vlgmr.msra.gmra.mrb[0].mxu0 %vm67_vm1, %v55_v10 }
  0x3b   :  { %v161_v33 = vsub.f32 0.0, %v160_v31  ;;  %v314_v31 = vshrl.u32 %v313_v22, 7 }
  0x3d   :  { %v162_v35 = vadd.f32 1e-20, %v161_v33 }
  0x64   :  { %s400_s8 = spop %399 }
  0x65   :  { %v167_v40 = vstv %s400_s8 }
 0x10d   :  { %v149_v12 = vpop.f32.mrb[0].mxu0 }
 0x10e   :  { %v150_v13 = vadd.f32 %v367_v11, %v149_v12  ;;  %v390_v14 = vpop.f32.mrb[1].mxu0 }
 0x110   :  { %v230_v15 = vsel %vm177_vm3, %v150_v13, -inf  ;;  %v224_v16 = vsel %vm169_vm4, %v150_v13, -inf  ;;  %v233_v17 = vsel %vm181_vm5, %v150_v13, -inf  ;;  %v227_v18 = vsel %vm173_vm6, %v150_v13, -inf }
 0x111   :  { %231 = vmax.xlane.f32.xlu1 %v230_v15  ;;  %225 = vmax.xlane.f32.xlu0 %v224_v16 }
 0x115   :  { %234 = vmax.xlane.f32.xlu1 %v233_v17  ;;  %228 = vmax.xlane.f32.xlu0 %v227_v18 }
 0x19e   :  { %v232_v20 = vpop.xlane.xlu1 %231  ;;  %v226_v21 = vpop.xlane.xlu0 %225 }
 0x1a2   :  { %v229_v23 = vpop.xlane.xlu0 %228  ;;  %v235_v25 = vpop.xlane.xlu1 %234 }
 0x1a3   :  { %v236_v24 = vsel %vm169_vm4, %v226_v21, %v229_v23 }
 0x1a4   :  { %v237_v26 = vsel %vm186_vm7, %v236_v24, %v232_v20 }
 0x1a5   :  { %v238_v27 = vsel %vm188_vm8, %v237_v26, %v235_v25 }
 0x1a6   :  { %v239_v28 = vsub.f32 %v150_v13, %v238_v27 }
 0x1a8   :  { %v240_v29 = vmul.f32 1.442695, %v239_v28 }
 0x1aa   :  { %419 = vpow2.f32 %v240_v29 }
 0x1ab   :  { %421 = vlog2.f32 %v162_v35  ;;  %v318_v35 = vstv %s720_s5  ;;  %s555_s5 = smov [#allocation9]  }
 0x1ac   :  { %vm319_vm9 = vcmp.lt.s32.totalorder %v314_v31, %v318_v35  ;;  %s343_s11 = sshll.u32 %s555_s5, 4  ;;  %s344_s11 = int_to_ptr.vmem [resolvable:$true] %s343_s11 }
 0x1ad   :  { %s493_s12 = scalar_lea.vmem %s344_s11, 128  ;;  %p498_p3 = scmp.lt.s32.totalorder %s344_s11, %s344_s11 }
 0x1ae   :  { %p494_p2 = scmp.ne.s32.totalorder %s344_s11, %s493_s12  ;;  %p499_p4 = scmp.lt.s32.totalorder %s493_s12, %s493_s12 }
 0x1b0   :  { %p500_p5 = por %p499_p4, %p498_p3 }
 0x1b2   :  { %p501_p6 = pnand %p500_p5, %p494_p2 }
 0x1b4   :  { %v420_v32 = vpop.eup %419 }
 0x1b5   :  { %275 = vrot.lane.b32.xlu1 %v420_v32, %s552_s3  ;;  %256 = vrot.lane.b32.xlu0 %v420_v32, %s553_s29  ;;  %v242_v34 = vmul.f32 %v420_v32, %v239_v28  ;;  %v422_v36 = vpop.eup %421  ;;  %v243_v42 = vsel %vm169_vm4, %v420_v32, 0.0 }
 0x1b6   :  { %v164_v37 = vmul.f32 0.6931472, %v422_v36 }
 0x1b7   :  { %v246_v54 = vsel %vm169_vm4, %v242_v34, 0.0 }
 0x1b8   :  { %v165_v38 = vsub.f32 0.0, %v164_v37 }
 0x1b9   :  { %293 = vrot.lane.b32.xlu1 %v420_v32, %s554_s30  ;;  %281 = vrot.lane.b32.xlu0 %v242_v34, %s552_s3 }
 0x1ba   :  { %v166_v39 = vadd.f32 %v165_v38, %v150_v13 }
 0x1bc   :  { %v168_v41 = vmul.f32 %v167_v40, %v166_v39 }
 0x1bd   :  { %263 = vrot.lane.b32.xlu1 %v242_v34, %s553_s29 }
 0x1be   :  { %v174_v43 = vsel %vm173_vm6, %v168_v41, -inf  ;;  %v178_v44 = vsel %vm177_vm3, %v168_v41, -inf  ;;  %v170_v45 = vsel %vm169_vm4, %v168_v41, -inf  ;;  %v182_v46 = vsel %vm181_vm5, %v168_v41, -inf }
 0x1c1   :  { %299 = vrot.lane.b32.xlu1 %v242_v34, %s554_s30 }
 0x1d8   :  { %244 = vadd.xlane.f32.xlu0 %v243_v42  ;;  %v374_v42 = vsel %vm319_vm9, 1.0, %v551_v1 }
 0x1dc   :  { %175 = vmax.xlane.f32.xlu0 %v174_v43 }
 0x1e0   :  { %179 = vmax.xlane.f32.xlu0 %v178_v44 }
 0x1e5   :  { %171 = vmax.xlane.f32.xlu1 %v170_v45 }
 0x1e9   :  { %183 = vmax.xlane.f32.xlu1 %v182_v46 }
 0x227   :  { %v276_v47 = vpop.permute.xlu1 %275  ;;  %v257_v48 = vpop.permute.xlu0 %256 }
 0x228   :  { %v259_v49 = vsel %vm169_vm4, %v257_v48, 0.0  ;;  %v278_v51 = vsel %vm169_vm4, %v276_v47, 0.0 }
 0x229   :  { %260 = vadd.xlane.f32.xlu0 %v259_v49 }
 0x22b   :  { %v294_v50 = vpop.permute.xlu1 %293  ;;  %v282_v56 = vpop.permute.xlu0 %281 }
 0x22c   :  { %v296_v52 = vsel %vm169_vm4, %v294_v50, 0.0  ;;  %v284_v58 = vsel %vm169_vm4, %v282_v56, 0.0 }
 0x22d   :  { %279 = vadd.xlane.f32.xlu0 %v278_v51  ;;  %297 = vadd.xlane.f32.xlu1 %v296_v52 }
 0x22f   :  { %v264_v53 = vpop.permute.xlu1 %263 }
 0x230   :  { %v266_v55 = vsel %vm169_vm4, %v264_v53, 0.0 }
 0x231   :  { %247 = vadd.xlane.f32.xlu0 %v246_v54  ;;  %267 = vadd.xlane.f32.xlu1 %v266_v55 }
 0x233   :  { %v300_v57 = vpop.permute.xlu1 %299 }
 0x234   :  { %v302_v59 = vsel %vm169_vm4, %v300_v57, 0.0 }
 0x235   :  { %285 = vadd.xlane.f32.xlu0 %v284_v58  ;;  %303 = vadd.xlane.f32.xlu1 %v302_v59 }
 0x265   :  { %v245_v60 = vpop.xlane.xlu0 %244 }
 0x269   :  { %v176_v61 = vpop.xlane.xlu0 %175 }
 0x26d   :  { %v180_v0 = vpop.xlane.xlu0 %179 }
 0x272   :  { %v172_v62 = vpop.xlane.xlu1 %171 }
 0x273   :  { %v185_v63 = vsel %vm169_vm4, %v172_v62, %v176_v61 }
 0x274   :  { %v187_v2 = vsel %vm186_vm7, %v185_v63, %v180_v0 }
 0x276   :  { %v184_v3 = vpop.xlane.xlu1 %183 }
 0x277   :  { %v189_v4 = vsel %vm188_vm8, %v187_v2, %v184_v3 }
 0x278   :  { %v190_v5 = vsub.f32 %v168_v41, %v189_v4 }
 0x27a   :  { %v191_v6 = vmul.f32 1.442695, %v190_v5 }
 0x27c   :  { %423 = vpow2.f32 %v191_v6 }
 0x27d   :  { %425 = vlog2.f32 %v245_v60 }
 0x27e   :  { %427 = vrcp.f32 %v245_v60 }
 0x286   :  { %v669_v7 = vpop.eup %423 }
 0x287   :  { %198 = vrot.lane.b32.xlu1 %v669_v7, %s553_s29  ;;  %v193_v8 = vsel %vm169_vm4, %v669_v7, 0.0  ;;  %v426_v12 = vpop.eup %425 }
 0x288   :  { %194 = vadd.xlane.f32.xlu0 %v193_v8  ;;  %v428_v13 = vpop.eup %427  ;;  %v253_v15 = vmul.f32 0.6931472, %v426_v12 }
 0x29e   :  { %205 = vrot.lane.b32.xlu0 %v669_v7, %s552_s3 }
 0x2a2   :  { %212 = vrot.lane.b32.xlu0 %v669_v7, %s554_s30 }
 0x2b6   :  { %v261_v9 = vpop.xlane.xlu0 %260 }
 0x2b7   :  { %429 = vrcp.f32 %v261_v9 }
 0x2b8   :  { %431 = vlog2.f32 %v261_v9 }
 0x2ba   :  { %v280_v10 = vpop.xlane.xlu0 %279  ;;  %v298_v11 = vpop.xlane.xlu1 %297 }
 0x2bb   :  { %433 = vrcp.f32 %v280_v10 }
 0x2bc   :  { %435 = vlog2.f32 %v280_v10 }
 0x2bd   :  { %437 = vrcp.f32 %v298_v11 }
 0x2be   :  { %v248_v14 = vpop.xlane.xlu0 %247  ;;  %439 = vlog2.f32 %v298_v11  ;;  %v268_v19 = vpop.xlane.xlu1 %267 }
 0x2bf   :  { %v250_v16 = vmul.f32 %v428_v13, %v248_v14 }
 0x2c1   :  { %v430_v17 = vpop.eup %429  ;;  %v254_v18 = vsub.f32 %v250_v16, %v253_v15 }
 0x2c2   :  { %v432_v20 = vpop.eup %431  ;;  %v270_v21 = vmul.f32 %v430_v17, %v268_v19  ;;  %v286_v26 = vpop.xlane.xlu0 %285 }
 0x2c3   :  { %v273_v23 = vmul.f32 0.6931472, %v432_v20  ;;  %v304_v36 = vpop.xlane.xlu1 %303 }
 0x2c4   :  { %v271_v24 = vadd.f32 %v270_v21, %v254_v18 }
 0x2c5   :  { %v434_v25 = vpop.eup %433 }
 0x2c6   :  { %v436_v27 = vpop.eup %435  ;;  %v274_v28 = vsub.f32 %v271_v24, %v273_v23  ;;  %v288_v29 = vmul.f32 %v434_v25, %v286_v26 }
 0x2c7   :  { %v438_v30 = vpop.eup %437  ;;  %v291_v32 = vmul.f32 0.6931472, %v436_v27 }
 0x2c8   :  { %v289_v33 = vadd.f32 %v288_v29, %v274_v28  ;;  %v440_v34 = vpop.eup %439  ;;  %v306_v38 = vmul.f32 %v438_v30, %v304_v36 }
 0x2c9   :  { %v309_v39 = vmul.f32 0.6931472, %v440_v34 }
 0x2ca   :  { %v292_v37 = vsub.f32 %v289_v33, %v291_v32 }
 0x2cc   :  { %v307_v40 = vadd.f32 %v306_v38, %v292_v37 }
 0x2ce   :  { %v310_v41 = vsub.f32 %v307_v40, %v309_v39 }
 0x2d0   :  { %v373_v43 = vadd.f32 8.317766, %v310_v41 }
 0x2d2   :  { %v322_v44 = vmul.f32 %v374_v42, %v373_v43 }
 0x2d4   :  { %v324_v47 = vsel %vm323_vm10, %v322_v44, 0.0 }
 0x2f9   :  { %v199_v45 = vpop.permute.xlu1 %198 }
 0x2fa   :  { %v201_v46 = vsel %vm169_vm4, %v199_v45, 0.0 }
 0x2fb   :  { %202 = vadd.xlane.f32.xlu0 %v201_v46 }
 0x2ff   :  { %325 = vadd.xlane.f32.xlu0 %v324_v47 }
 0x315   :  { %v195_v48 = vpop.xlane.xlu0 %194 }
 0x319   :  { %v206_v49 = vpop.permute.xlu0 %205 }
 0x31a   :  { %v208_v50 = vsel %vm169_vm4, %v206_v49, 0.0 }
 0x31b   :  { %209 = vadd.xlane.f32.xlu1 %v208_v50 }
 0x31d   :  { %v213_v51 = vpop.permute.xlu0 %212 }
 0x31e   :  { %v215_v52 = vsel %vm169_vm4, %v213_v51, 0.0 }
 0x31f   :  { %216 = vadd.xlane.f32.xlu1 %v215_v52 }
 0x388   :  { %v203_v53 = vpop.xlane.xlu0 %202 }
 0x389   :  { %441 = vrcp.f32 %v203_v53 }
 0x38c   :  { %v326_v1 = vpop.xlane.xlu0 %325 }
 0x38d   :  { %v327_v54 = vrot.slane %v326_v1, 4 }
 0x38f   :  { %v328_v55 = vadd.f32 %v327_v54, %v326_v1 }
 0x391   :  { %v329_v56 = vrot.slane %v328_v55, 2 }
 0x393   :  { %v330_v57 = vadd.f32 %v329_v56, %v328_v55  ;;  %v442_v62 = vpop.eup %441 }
 0x395   :  { %v331_v58 = vrot.slane %v330_v57, 1 }
 0x397   :  { %v332_v59 = vadd.f32 %v331_v58, %v330_v57 }
 0x399   :  { %401 = vpush %v332_v59 }
 0x3a8   :  { %v210_v60 = vpop.xlane.xlu1 %209 }
 0x3a9   :  { %443 = vrcp.f32 %v210_v60 }
 0x3aa   :  { %445 = vrcp.f32 %v195_v48 }
 0x3ac   :  { %v217_v61 = vpop.xlane.xlu1 %216 }
 0x3ad   :  { %447 = vrcp.f32 %v217_v61 }
 0x3b3   :  { %v444_v63 = vpop.eup %443 }
 0x3b4   :  { %v446_v0 = vpop.eup %445 }
 0x3b5   :  { %v219_v2 = vsel %vm169_vm4, %v446_v0, %v442_v62 }
 0x3b6   :  { %v220_v4 = vsel %vm186_vm7, %v219_v2, %v444_v63 }
 0x3b7   :  { %v448_v3 = vpop.eup %447 }
 0x3b8   :  { %v221_v5 = vsel %vm188_vm8, %v220_v4, %v448_v3 }
 0x3b9   :  { %v222_v6 = vmul.f32 %v669_v7, %v221_v5 }
 0x3bb   :  { %223 = vst.msk [vmem:[#allocation9] sm:$0xff] %vm67_vm1, %v222_v6 }
 0x3bc   :  { %504 = shalt.err (!%p501_p6)
}
 0x3bd   :  { %s505_s15 = scalar_lea.hbm %s721_s6, 128 }
 0x3be   :  { %p506_p7 = scmp.ne.s32.totalorder %s721_s6, %s505_s15  ;;  %p509_p8 = scmp.lt.u32.totalorder %s505_s15, %s721_s6 }
 0x3c0   :  { %p511_p9 = pnand %p509_p8, %p506_p7 }
 0x3c2   :  { %514 = shalt.err (!%p511_p9)
}
 0x3c3   :  { %346 = dma.vmem_to_hbm [thread:$0]  %s344_s11, 128, %s721_s6, [#allocation6]   ;;  %vm335_vm11 = vcmask 0  }
 0x3c4   :  { %s556_s22 = smov [#allocation10]  }
 0x3c5   :  { %s353_s0 = sshll.u32 %s556_s22, 4  ;;  %s354_s0 = int_to_ptr.vmem [resolvable:$true] %s353_s0 }
 0x3c6   :  { %s515_s24 = scalar_lea.vmem %s354_s0, 16  ;;  %s519_s25 = scalar_lea.vmem %s354_s0, 32 }
 0x3c7   :  { %p516_p10 = scmp.ne.s32.totalorder %s354_s0, %s515_s24  ;;  %p520_p11 = scmp.lt.s32.totalorder %s354_s0, %s354_s0 }
 0x3c8   :  { %p521_p12 = scmp.lt.s32.totalorder %s519_s25, %s515_s24 }
 0x3ca   :  { %s402_s23 = spop %401  ;;  %p522_p13 = por %p521_p12, %p520_p11 }
 0x3cb   :  { %v334_v7 = vstv %s402_s23 }
 0x3cc   :  { %336 = vst.msk [vmem:[#allocation10] sm:$0x1] %vm335_vm11, %v334_v7  ;;  %p523_p0 = pnand %p522_p13, %p516_p10 }
 0x3ce   :  { %526 = shalt.err (!%p523_p0)
}
 0x3cf   :  { %s527_s1 = scalar_lea.hbm %s722_s7, 16 }
 0x3d0   :  { %p528_p1 = scmp.ne.s32.totalorder %s722_s7, %s527_s1  ;;  %p531_p2 = scmp.lt.u32.totalorder %s527_s1, %s722_s7 }
 0x3d2   :  { %p533_p3 = pnand %p531_p2, %p528_p1 }
 0x3d4   :  { %536 = shalt.err (!%p533_p3)
}
 0x3d5   :  { %356 = dma.vmem_to_hbm [thread:$0]  %s354_s0, 16, %s722_s7, [#allocation11]  }
 0x3d6   :  { %541 = dma.done.wait [#allocation6], 128  }
 0x3d7   :  { %542 = vsyncadd [#allocation6], 4294967168 }
 0x3d8   :  { %543 = dma.done.wait [#allocation11], 16  }
 0x3d9   :  { %544 = vsyncadd [#allocation11], 4294967280 }
 0x3da   :  { %363 = vsyncpa [#allocation5], 1 }
 0x3db   :  { %364 = vsyncpa [#allocation8], 1 }
 0x3dc   :  { %365 = vsyncpa [#allocation6], 1 }
 0x3dd   :  { %366 = vsyncpa [#allocation11], 1 }

</bundles_post_ra>
